<compile_context>
chip_gen: v7x
topology: tpu7x:2x2x1
jax: 0.10.0
libtpu: 0.0.40
codegen_flags: <defaults>
</compile_context>

<pallas_src>
import jax
import jax.numpy as jnp
from jax.experimental import pallas as pl
from jax.experimental.pallas import tpu as pltpu

LANE = 128


def _round_up(x, m):
    return ((x + m - 1) // m) * m


# ----------------------------------------------------------------------------
# Kernel
# ----------------------------------------------------------------------------
def _critic_kernel(state_ref, action_ref, w1s_ref, w1a_ref, wpack_ref,
                   bpack_ref, o_ref):
    bias = bpack_ref[...]                                   # (8, 128) f32

    s = state_ref[...].astype(jnp.bfloat16)                 # (TB, SD)
    a = action_ref[...].astype(jnp.bfloat16)                # (TB, AD)

    # Layer 1: fused concat -> x @ W1 == state @ W1[:SD] + action @ W1[SD:]
    h = (jnp.dot(s, w1s_ref[...], preferred_element_type=jnp.float32)
         + jnp.dot(a, w1a_ref[...], preferred_element_type=jnp.float32)
         + bias[0:1, :])
    h = jnp.maximum(h, 0.0)

    # Layers 2-5: bf16 MXU matmuls, f32 bias add / ReLU (no ReLU on layer 5).
    for i in range(4):
        acc = jnp.dot(h.astype(jnp.bfloat16), wpack_ref[i],
                      preferred_element_type=jnp.float32) + bias[i + 1:i + 2, :]
        h = jnp.maximum(acc, 0.0) if i < 3 else acc

    o_ref[...] = h.astype(o_ref.dtype)                      # (TB, 128) lane-dense


# ----------------------------------------------------------------------------
# Parameter packing (done once, outside the hot path)
# ----------------------------------------------------------------------------
def pack_params(params, state_dim, num_actions):
    """Pack f32 (in, out) weights into lane-padded bf16 blocks + one bias block.

    Zero-padding is exact: padded weight rows/cols and bias lanes are zero, so
    padded activation lanes stay exactly 0 through every layer.
    """
    def pad_cols(w):
        return jnp.pad(w, ((0, 0), (0, LANE - w.shape[1])))

    def pad_full(w):
        return jnp.pad(w, ((0, LANE - w.shape[0]), (0, LANE - w.shape[1])))

    w1 = params["w1"]
    w1s = pad_cols(w1[:state_dim]).astype(jnp.bfloat16)       # (SD, 128)
    w1a = pad_cols(w1[state_dim:]).astype(jnp.bfloat16)       # (AD, 128)

    wpack = jnp.stack([pad_full(params[f"w{i}"]) for i in range(2, 6)]
                      ).astype(jnp.bfloat16)                  # (4, 128, 128)

    bias_rows = [jnp.pad(params[f"b{i}"].reshape(1, -1),
                         ((0, 0), (0, LANE - params[f"b{i}"].shape[-1])))
                 for i in range(1, 6)]
    bpack = jnp.concatenate(bias_rows + [jnp.zeros((3, LANE), jnp.float32)],
                            axis=0)                           # (8, 128) f32

    return {"w1s": w1s, "w1a": w1a, "wpack": wpack, "bpack": bpack,
            "num_actions": int(num_actions)}


# ----------------------------------------------------------------------------
# Forward wrapper
# ----------------------------------------------------------------------------
def critic_ddpg_forward(state, action, packed, *, tb=256):
    """state: (B, state_dim), action: (B, action_dim) -> (B, num_actions)."""
    state = state.astype(jnp.float32)
    action = action.astype(jnp.float32)
    B, SD = state.shape
    AD = action.shape[1]
    num_actions = packed["num_actions"]

    # Batch tiling: one grid step per TB rows; weights stay resident in VMEM.
    TB = min(tb, _round_up(B, 8))
    Bp = _round_up(B, TB)
    if Bp != B:
        state = jnp.pad(state, ((0, Bp - B), (0, 0)))
        action = jnp.pad(action, ((0, Bp - B), (0, 0)))
    grid = (Bp // TB,)

    operands = (state, action, packed["w1s"], packed["w1a"],
                packed["wpack"], packed["bpack"])

    def batch_spec(shape):
        nd = len(shape)
        return pl.BlockSpec((TB,) + tuple(shape[1:]),
                            lambda i, _nd=nd: (i,) + (0,) * (_nd - 1))

    def resident_spec(shape):
        nd = len(shape)
        return pl.BlockSpec(tuple(shape),
                            lambda i, _nd=nd: (0,) * _nd)

    in_specs = [
        batch_spec(state.shape),
        batch_spec(action.shape),
        resident_spec(packed["w1s"].shape),
        resident_spec(packed["w1a"].shape),
        resident_spec(packed["wpack"].shape),
        resident_spec(packed["bpack"].shape),
    ]

    bytes_accessed = (sum(int(op.size) * op.dtype.itemsize for op in operands)
                      + Bp * LANE * 4)
    cost = pl.CostEstimate(
        flops=2 * Bp * (SD * LANE + AD * LANE + 4 * LANE * LANE),
        transcendentals=0,
        bytes_accessed=bytes_accessed)

    out_padded = pl.pallas_call(
        _critic_kernel,
        out_shape=jax.ShapeDtypeStruct((Bp, LANE), jnp.float32),
        grid=grid,
        in_specs=in_specs,
        out_specs=pl.BlockSpec((TB, LANE), lambda i: (i, 0)),
        compiler_params=pltpu.CompilerParams(
            dimension_semantics=("parallel",)),
        cost_estimate=cost,
    )(*operands)

    return out_padded[:B, :num_actions]


# ----------------------------------------------------------------------------
# Init + pure-JAX reference
# ----------------------------------------------------------------------------
def init_params(key, input_size, hidden_size, num_actions):
    """Deterministic PyTorch-style Linear init; weights stored as (in, out)."""
    sizes = [input_size] + list(hidden_size) + [num_actions]
    params = {}
    for i in range(5):
        fan_in, fan_out = sizes[i], sizes[i + 1]
        key, kw, kb = jax.random.split(key, 3)
        bound = 1.0 / (fan_in ** 0.5)
        params[f"w{i+1}"] = jax.random.uniform(
            kw, (fan_in, fan_out), jnp.float32, -bound, bound)
        params[f"b{i+1}"] = jax.random.uniform(
            kb, (1, fan_out), jnp.float32, -bound, bound)
    return params


def reference_forward(state, action, params):
    x = jnp.concatenate([state, action], axis=1)
    h = x
    for i in range(1, 5):
        h = jnp.maximum(h @ params[f"w{i}"] + params[f"b{i}"], 0.0)
    return h @ params["w5"] + params["b5"]


if __name__ == "__main__":
    key = jax.random.PRNGKey(0)

    batch = 8
    state_dim = 24
    action_dim = 8          # input_size = state_dim + action_dim = 32
    hidden_size = (64, 64, 32, 32)
    num_actions = 1         # critic outputs a single Q-value

    key, ks, ka, kp = jax.random.split(key, 4)
    state = jax.random.normal(ks, (batch, state_dim), jnp.float32)
    action = jax.random.normal(ka, (batch, action_dim), jnp.float32)
    params = init_params(kp, state_dim + action_dim, hidden_size, num_actions)
    packed = pack_params(params, state_dim, num_actions)

    out = critic_ddpg_forward(state, action, packed)
    out = jax.block_until_ready(out)

    ref = reference_forward(state, action, params)
    assert out.shape == (batch, num_actions)
    # bf16 matmul inputs with f32 accumulation -> small deviation vs f32 ref.
    assert jnp.allclose(out, ref, atol=3e-2, rtol=3e-2)

    print("KERNEL_OK")
</pallas_src>

<mosaic_0001>
module attributes {stable_mosaic.version = 11 : i64} {
  func.func @_critic_kernel(%arg0: i32, %arg1: memref<8x24xf32, #tpu.memory_space<vmem>>, %arg2: memref<8x8xf32, #tpu.memory_space<vmem>>, %arg3: memref<24x128xbf16, #tpu.memory_space<vmem>>, %arg4: memref<8x128xbf16, #tpu.memory_space<vmem>>, %arg5: memref<4x128x128xbf16, #tpu.memory_space<vmem>>, %arg6: memref<8x128xf32, #tpu.memory_space<vmem>>, %arg7: memref<8x128xf32, #tpu.memory_space<vmem>>) attributes {dimension_semantics = [#tpu.dimension_semantics<parallel>], iteration_bounds = array<i64: 1>, scalar_prefetch = 0 : i64, scratch_operands = 0 : i64, tpu.core_type = #tpu.core_type<tc>, window_params = [{transform_indices = @transform_0, window_bounds = array<i64: 8, 24>}, {transform_indices = @transform_1, window_bounds = array<i64: 8, 8>}, {pipeline_mode = #tpu.pipeline_mode<synchronous>, transform_indices = @transform_2, window_bounds = array<i64: 24, 128>}, {pipeline_mode = #tpu.pipeline_mode<synchronous>, transform_indices = @transform_3, window_bounds = array<i64: 8, 128>}, {pipeline_mode = #tpu.pipeline_mode<synchronous>, transform_indices = @transform_4, window_bounds = array<i64: 4, 128, 128>}, {pipeline_mode = #tpu.pipeline_mode<synchronous>, transform_indices = @transform_5, window_bounds = array<i64: 8, 128>}, {transform_indices = @transform_6, window_bounds = array<i64: 8, 128>}]} {
    %c0 = arith.constant 0 : index
    %c0_0 = arith.constant 0 : index
    %0 = vector.load %arg6[%c0, %c0_0] : memref<8x128xf32, #tpu.memory_space<vmem>>, vector<8x128xf32>
    %c0_1 = arith.constant 0 : index
    %c0_2 = arith.constant 0 : index
    %1 = vector.load %arg1[%c0_1, %c0_2] : memref<8x24xf32, #tpu.memory_space<vmem>>, vector<8x24xf32>
    %2 = arith.truncf %1 : vector<8x24xf32> to vector<8x24xbf16>
    %c0_3 = arith.constant 0 : index
    %c0_4 = arith.constant 0 : index
    %3 = vector.load %arg2[%c0_3, %c0_4] : memref<8x8xf32, #tpu.memory_space<vmem>>, vector<8x8xf32>
    %4 = arith.truncf %3 : vector<8x8xf32> to vector<8x8xbf16>
    %c0_5 = arith.constant 0 : index
    %c0_6 = arith.constant 0 : index
    %5 = vector.load %arg3[%c0_5, %c0_6] : memref<24x128xbf16, #tpu.memory_space<vmem>>, vector<24x128xbf16>
    %cst = arith.constant dense<0.000000e+00> : vector<8x128xf32>
    %6 = tpu.matmul %2, %5, %cst {dimension_numbers = #tpu.dot_dimension_numbers<[1], [0], [0], [1], [0, 0, 1, 1], [], []>} : vector<8x24xbf16>, vector<24x128xbf16>, vector<8x128xf32> -> vector<8x128xf32>
    %c0_7 = arith.constant 0 : index
    %c0_8 = arith.constant 0 : index
    %7 = vector.load %arg4[%c0_7, %c0_8] : memref<8x128xbf16, #tpu.memory_space<vmem>>, vector<8x128xbf16>
    %cst_9 = arith.constant dense<0.000000e+00> : vector<8x128xf32>
    %8 = tpu.matmul %4, %7, %cst_9 {dimension_numbers = #tpu.dot_dimension_numbers<[1], [0], [0], [1], [0, 0, 1, 1], [], []>} : vector<8x8xbf16>, vector<8x128xbf16>, vector<8x128xf32> -> vector<8x128xf32>
    %9 = arith.addf %6, %8 : vector<8x128xf32>
    %10 = vector.extract_strided_slice %0 {offsets = [0, 0], sizes = [1, 128], strides = [1, 1]} : vector<8x128xf32> to vector<1x128xf32>
    %11 = vector.broadcast %10 : vector<1x128xf32> to vector<8x128xf32>
    %12 = arith.addf %9, %11 : vector<8x128xf32>
    %cst_10 = arith.constant 0.000000e+00 : f32
    %13 = vector.broadcast %cst_10 : f32 to vector<8x128xf32>
    %14 = arith.maximumf %12, %13 : vector<8x128xf32>
    %15 = arith.truncf %14 : vector<8x128xf32> to vector<8x128xbf16>
    %c0_11 = arith.constant 0 : index
    %c0_12 = arith.constant 0 : index
    %c0_13 = arith.constant 0 : index
    %16 = vector.load %arg5[%c0_11, %c0_12, %c0_13] : memref<4x128x128xbf16, #tpu.memory_space<vmem>>, vector<1x128x128xbf16>
    %17 = vector.shape_cast %16 : vector<1x128x128xbf16> to vector<128x128xbf16>
    %cst_14 = arith.constant dense<0.000000e+00> : vector<8x128xf32>
    %18 = tpu.matmul %15, %17, %cst_14 {dimension_numbers = #tpu.dot_dimension_numbers<[1], [0], [0], [1], [0, 0, 1, 1], [], []>} : vector<8x128xbf16>, vector<128x128xbf16>, vector<8x128xf32> -> vector<8x128xf32>
    %19 = vector.extract_strided_slice %0 {offsets = [1, 0], sizes = [1, 128], strides = [1, 1]} : vector<8x128xf32> to vector<1x128xf32>
    %20 = vector.broadcast %19 : vector<1x128xf32> to vector<8x128xf32>
    %21 = arith.addf %18, %20 : vector<8x128xf32>
    %cst_15 = arith.constant 0.000000e+00 : f32
    %22 = vector.broadcast %cst_15 : f32 to vector<8x128xf32>
    %23 = arith.maximumf %21, %22 : vector<8x128xf32>
    %24 = arith.truncf %23 : vector<8x128xf32> to vector<8x128xbf16>
    %c1 = arith.constant 1 : index
    %c0_16 = arith.constant 0 : index
    %c0_17 = arith.constant 0 : index
    %25 = vector.load %arg5[%c1, %c0_16, %c0_17] : memref<4x128x128xbf16, #tpu.memory_space<vmem>>, vector<1x128x128xbf16>
    %26 = vector.shape_cast %25 : vector<1x128x128xbf16> to vector<128x128xbf16>
    %cst_18 = arith.constant dense<0.000000e+00> : vector<8x128xf32>
    %27 = tpu.matmul %24, %26, %cst_18 {dimension_numbers = #tpu.dot_dimension_numbers<[1], [0], [0], [1], [0, 0, 1, 1], [], []>} : vector<8x128xbf16>, vector<128x128xbf16>, vector<8x128xf32> -> vector<8x128xf32>
    %28 = vector.extract_strided_slice %0 {offsets = [2, 0], sizes = [1, 128], strides = [1, 1]} : vector<8x128xf32> to vector<1x128xf32>
    %29 = vector.broadcast %28 : vector<1x128xf32> to vector<8x128xf32>
    %30 = arith.addf %27, %29 : vector<8x128xf32>
    %cst_19 = arith.constant 0.000000e+00 : f32
    %31 = vector.broadcast %cst_19 : f32 to vector<8x128xf32>
    %32 = arith.maximumf %30, %31 : vector<8x128xf32>
    %33 = arith.truncf %32 : vector<8x128xf32> to vector<8x128xbf16>
    %c2 = arith.constant 2 : index
    %c0_20 = arith.constant 0 : index
    %c0_21 = arith.constant 0 : index
    %34 = vector.load %arg5[%c2, %c0_20, %c0_21] : memref<4x128x128xbf16, #tpu.memory_space<vmem>>, vector<1x128x128xbf16>
    %35 = vector.shape_cast %34 : vector<1x128x128xbf16> to vector<128x128xbf16>
    %cst_22 = arith.constant dense<0.000000e+00> : vector<8x128xf32>
    %36 = tpu.matmul %33, %35, %cst_22 {dimension_numbers = #tpu.dot_dimension_numbers<[1], [0], [0], [1], [0, 0, 1, 1], [], []>} : vector<8x128xbf16>, vector<128x128xbf16>, vector<8x128xf32> -> vector<8x128xf32>
    %37 = vector.extract_strided_slice %0 {offsets = [3, 0], sizes = [1, 128], strides = [1, 1]} : vector<8x128xf32> to vector<1x128xf32>
    %38 = vector.broadcast %37 : vector<1x128xf32> to vector<8x128xf32>
    %39 = arith.addf %36, %38 : vector<8x128xf32>
    %cst_23 = arith.constant 0.000000e+00 : f32
    %40 = vector.broadcast %cst_23 : f32 to vector<8x128xf32>
    %41 = arith.maximumf %39, %40 : vector<8x128xf32>
    %42 = arith.truncf %41 : vector<8x128xf32> to vector<8x128xbf16>
    %c3 = arith.constant 3 : index
    %c0_24 = arith.constant 0 : index
    %c0_25 = arith.constant 0 : index
    %43 = vector.load %arg5[%c3, %c0_24, %c0_25] : memref<4x128x128xbf16, #tpu.memory_space<vmem>>, vector<1x128x128xbf16>
    %44 = vector.shape_cast %43 : vector<1x128x128xbf16> to vector<128x128xbf16>
    %cst_26 = arith.constant dense<0.000000e+00> : vector<8x128xf32>
    %45 = tpu.matmul %42, %44, %cst_26 {dimension_numbers = #tpu.dot_dimension_numbers<[1], [0], [0], [1], [0, 0, 1, 1], [], []>} : vector<8x128xbf16>, vector<128x128xbf16>, vector<8x128xf32> -> vector<8x128xf32>
    %46 = vector.extract_strided_slice %0 {offsets = [4, 0], sizes = [1, 128], strides = [1, 1]} : vector<8x128xf32> to vector<1x128xf32>
    %47 = vector.broadcast %46 : vector<1x128xf32> to vector<8x128xf32>
    %48 = arith.addf %45, %47 : vector<8x128xf32>
    %c0_27 = arith.constant 0 : index
    %c0_28 = arith.constant 0 : index
    %49 = vector.load %arg7[%c0_27, %c0_28] : memref<8x128xf32, #tpu.memory_space<vmem>>, vector<8x128xf32>
    tpu.vector_store %arg7[%c0_27, %c0_28], %48 {strides = array<i32>} : memref<8x128xf32, #tpu.memory_space<vmem>>, vector<8x128xf32>,
    return
  }
  func.func @transform_0(%arg0: i32) -> (i32, i32) {
    %c0_i32 = arith.constant 0 : i32
    %c0_i32_0 = arith.constant 0 : i32
    return %arg0, %c0_i32 : i32, i32
  }
  func.func @transform_1(%arg0: i32) -> (i32, i32) {
    %c0_i32 = arith.constant 0 : i32
    %c0_i32_0 = arith.constant 0 : i32
    return %arg0, %c0_i32 : i32, i32
  }
  func.func @transform_2(%arg0: i32) -> (i32, i32) {
    %c0_i32 = arith.constant 0 : i32
    %c0_i32_0 = arith.constant 0 : i32
    %c0_i32_1 = arith.constant 0 : i32
    return %c0_i32, %c0_i32_0 : i32, i32
  }
  func.func @transform_3(%arg0: i32) -> (i32, i32) {
    %c0_i32 = arith.constant 0 : i32
    %c0_i32_0 = arith.constant 0 : i32
    %c0_i32_1 = arith.constant 0 : i32
    return %c0_i32, %c0_i32_0 : i32, i32
  }
  func.func @transform_4(%arg0: i32) -> (i32, i32, i32) {
    %c0_i32 = arith.constant 0 : i32
    %c0_i32_0 = arith.constant 0 : i32
    %c0_i32_1 = arith.constant 0 : i32
    %c0_i32_2 = arith.constant 0 : i32
    return %c0_i32, %c0_i32_0, %c0_i32_1 : i32, i32, i32
  }
  func.func @transform_5(%arg0: i32) -> (i32, i32) {
    %c0_i32 = arith.constant 0 : i32
    %c0_i32_0 = arith.constant 0 : i32
    %c0_i32_1 = arith.constant 0 : i32
    return %c0_i32, %c0_i32_0 : i32, i32
  }
  func.func @transform_6(%arg0: i32) -> (i32, i32) {
    %c0_i32 = arith.constant 0 : i32
    %c0_i32_0 = arith.constant 0 : i32
    return %arg0, %c0_i32 : i32, i32
  }
}

</mosaic_0001>

<bundles_post_ra>
// kernel: tpu_custom_call.1
= control target key start
LH: loop header
LB: loop body
LE: loop exit
PB: predicated region body
PF: predicated region fallthrough
CT: control target
= control target key end

     0   :  { %11 = vsyncpa [#allocation3], 0  ;;  %s1158_s0 = inlined_call_operand.hbm [shape: f32[8,24], index: 0, kind: input, shape index: {}]   ;;  %s1159_s1 = inlined_call_operand.hbm [shape: f32[8,8], index: 1, kind: input, shape index: {}]   ;;  %s1160_s2 = inlined_call_operand.hbm [shape: bf16[24,128], index: 2, kind: input, shape index: {}]   ;;  %s1161_s3 = inlined_call_operand.vmem [shape: bf16[8,128], index: 3, kind: input, shape index: {}]   ;;  %s1162_s4 = inlined_call_operand.hbm [shape: bf16[4,128,128], index: 4, kind: input, shape index: {}]   ;;  %s1163_s5 = inlined_call_operand.vmem [shape: f32[8,128], index: 5, kind: input, shape index: {}]   ;;  %s1164_s6 = inlined_call_operand.hbm [shape: f32[8,128], index: 6, kind: output, shape index: {}]  }
   0x1   :  { %12 = vsyncpa [#allocation6], 0 }
   0x2   :  { %13 = vsyncpa [#allocation9], 0 }
   0x3   :  { %14 = vsyncpa [#allocation4], 0  ;;  %s987_s21 = smov [#allocation5]   ;;  %s988_s23 = smov [#allocation2]  }
   0x4   :  { %s31_s22 = sshll.u32 %s987_s21, 4  ;;  %s21_s24 = sshll.u32 %s988_s23, 4  ;;  %s32_s22 = int_to_ptr.vmem [resolvable:$true] %s31_s22  ;;  %s22_s24 = int_to_ptr.vmem [resolvable:$true] %s21_s24 }
   0x5   :  { %s869_s27 = scalar_lea.hbm %s1159_s1, 128 }
   0x6   :  { %p870_p0 = scmp.ne.s32.totalorder %s1159_s1, %s869_s27  ;;  %p873_p1 = scmp.lt.u32.totalorder %s869_s27, %s1159_s1 }
   0x8   :  { %p875_p2 = pnand %p873_p1, %p870_p0 }
   0xa   :  { %878 = shalt.err (!%p875_p2)
}
   0xb   :  { %s879_s8 = scalar_lea.vmem %s32_s22, 128  ;;  %p884_p4 = scmp.lt.s32.totalorder %s32_s22, %s32_s22 }
   0xc   :  { %p880_p3 = scmp.ne.s32.totalorder %s32_s22, %s879_s8  ;;  %p885_p5 = scmp.lt.s32.totalorder %s879_s8, %s879_s8 }
   0xe   :  { %p886_p6 = por %p885_p5, %p884_p4 }
  0x10   :  { %p887_p7 = pnand %p886_p6, %p880_p3 }
  0x12   :  { %890 = shalt.err (!%p887_p7)
}
  0x13   :  { %34 = dma.hbm_to_vmem [thread:$0]  %s1159_s1, 128, %s32_s22, [#allocation6]  }
  0x14   :  { %s891_s13 = scalar_lea.hbm %s1158_s0, 128 }
  0x15   :  { %p892_p8 = scmp.ne.s32.totalorder %s1158_s0, %s891_s13  ;;  %p895_p9 = scmp.lt.u32.totalorder %s891_s13, %s1158_s0 }
  0x17   :  { %p897_p10 = pnand %p895_p9, %p892_p8 }
  0x19   :  { %900 = shalt.err (!%p897_p10)
}
  0x1a   :  { %s901_s18 = scalar_lea.vmem %s22_s24, 128  ;;  %p906_p12 = scmp.lt.s32.totalorder %s22_s24, %s22_s24 }
  0x1b   :  { %p902_p11 = scmp.ne.s32.totalorder %s22_s24, %s901_s18  ;;  %p907_p13 = scmp.lt.s32.totalorder %s901_s18, %s901_s18 }
  0x1d   :  { %p908_p0 = por %p907_p13, %p906_p12 }
  0x1f   :  { %p909_p1 = pnand %p908_p0, %p902_p11 }
  0x21   :  { %912 = shalt.err (!%p909_p1)
}
  0x22   :  { %24 = dma.hbm_to_vmem [thread:$0]  %s1158_s0, 128, %s22_s24, [#allocation3]  }
  0x23   :  { %s989_s20 = smov [#allocation7]   ;;  %s913_s25 = scalar_lea.hbm %s1160_s2, 192 }
  0x24   :  { %s40_s21 = sshll.u32 %s989_s20, 4  ;;  %p914_p2 = scmp.ne.s32.totalorder %s1160_s2, %s913_s25  ;;  %s41_s21 = int_to_ptr.vmem [resolvable:$true] %s40_s21 }
  0x25   :  { %p917_p3 = scmp.lt.u32.totalorder %s913_s25, %s1160_s2 }
  0x27   :  { %p919_p4 = pnand %p917_p3, %p914_p2 }
  0x29   :  { %922 = shalt.err (!%p919_p4)
}
  0x2a   :  { %s923_s30 = scalar_lea.vmem %s41_s21, 192  ;;  %p928_p6 = scmp.lt.s32.totalorder %s41_s21, %s41_s21 }
  0x2b   :  { %p924_p5 = scmp.ne.s32.totalorder %s41_s21, %s923_s30  ;;  %p929_p7 = scmp.lt.s32.totalorder %s923_s30, %s923_s30 }
  0x2d   :  { %p930_p8 = por %p929_p7, %p928_p6 }
  0x2f   :  { %p931_p9 = pnand %p930_p8, %p924_p5 }
  0x31   :  { %934 = shalt.err (!%p931_p9)
}
  0x32   :  { %s990_s0 = smov 64   ;;  %s991_s24 = smov 4  }
  0x33   :  { %46 = dma.hbm_to_vmem [thread:$0]  %s1160_s2, 192, %s41_s21, [#allocation6], %s990_s0, %s990_s0, %s991_s24  }
  0x34   :  { %s992_s9 = smov [#allocation8]   ;;  %s935_s13 = scalar_lea.hbm %s1162_s4, 4096 }
  0x35   :  { %s54_s10 = sshll.u32 %s992_s9, 4  ;;  %p936_p10 = scmp.ne.s32.totalorder %s1162_s4, %s935_s13  ;;  %s55_s10 = int_to_ptr.vmem [resolvable:$true] %s54_s10 }
  0x36   :  { %p939_p11 = scmp.lt.u32.totalorder %s935_s13, %s1162_s4 }
  0x38   :  { %p941_p12 = pnand %p939_p11, %p936_p10 }
  0x3a   :  { %944 = shalt.err (!%p941_p12)
}
  0x3b   :  { %s945_s18 = scalar_lea.vmem %s55_s10, 4096  ;;  %p950_p0 = scmp.lt.s32.totalorder %s55_s10, %s55_s10 }
  0x3c   :  { %p946_p13 = scmp.ne.s32.totalorder %s55_s10, %s945_s18  ;;  %p951_p1 = scmp.lt.s32.totalorder %s945_s18, %s945_s18 }
  0x3e   :  { %p952_p2 = por %p951_p1, %p950_p0 }
  0x40   :  { %p953_p3 = pnand %p952_p2, %p946_p13 }
  0x42   :  { %956 = shalt.err (!%p953_p3)
}
  0x43   :  { %60 = dma.hbm_to_vmem [thread:$0]  %s1162_s4, 4096, %s55_s10, [#allocation9], %s990_s0, %s990_s0, %s991_s24  }
  0x44   :  { %979 = dma.done.wait [#allocation3], 128  }
  0x45   :  { %980 = vsyncadd [#allocation3], 4294967168 }
  0x46   :  { %981 = dma.done.wait [#allocation6], 320  }
  0x47   :  { %982 = vsyncadd [#allocation6], 4294966976 }
  0x48   :  { %983 = dma.done.wait [#allocation9], 4096  }
  0x49   :  { %984 = vsyncadd [#allocation9], 4294963200  ;;  %v993_v0 = vmov 0.0   ;;  %vm994_vm0 = vmmov 0   ;;  %vm89_vm1 = vcmask 1043456   ;;  %v835_v1 = vld [vmem:[#allocation7] sm:$0xff]   ;;  %v189_v24 = vlaneseq }
  0x4a   :  { %738 = vmatprep.subr.bf16.mxu1 %v993_v0  ;;  %732 = vmatprep.subr.bf16.mxu0 %v993_v0  ;;  %v84_v2 = vld [vmem:[%s1161_s3] sm:$0xf]  ;;  %v79_v3 = vld [vmem:[#allocation5] sm:$0xff]  ;;  %v836_v6 = vld [vmem:[#allocation7 + $0x8] ss:$0 sps:$4 sm:$0xff]   ;;  %vm85_vm2 = vcmask 64512  }
  0x4b   :  { %734 = vmatprep.mubr.msk.bf16.mxu0 %vm994_vm0, %v993_v0  ;;  %742 = vmatprep.mubr.msk.bf16.mxu1 %vm994_vm0, %v993_v0  ;;  %v91_v4 = vsel %vm89_vm1, %v84_v2, 0  ;;  %v80_v5 = vpack.c.bf16 %v79_v3, %v79_v3  ;;  %v77_v7 = vld [vmem:[#allocation2] sm:$0xff]  ;;  %v147_v9 = vsel %vm89_vm1, %v836_v6, 0  ;;  %vm142_vm3 = vcmask 195584   ;;  %v839_v12 = vld [vmem:[#allocation8 + $0x10] sm:$0xff]   ;;  %v840_v13 = vld [vmem:[#allocation8 + $0x18] sm:$0xff]  }
  0x4c   :  { %739 = vmatpush3.bf16.msra.mxu1 %v835_v1  ;;  %733 = vmatpush3.bf16.msra.mxu0 %v91_v4  ;;  %v837_v8 = vld [vmem:[#allocation8] sm:$0xff]   ;;  %v78_v10 = vpack.c.bf16 %v77_v7, %v77_v7  ;;  %v838_v11 = vld [vmem:[#allocation8 + $0x8] sm:$0xff]   ;;  %v843_v16 = vld [vmem:[#allocation8 + $0x30] sm:$0xff]   ;;  %v1109_v25 = vshrl.u32 %v189_v24, 7 }
  0x4d   :  { %740 = vmatprep.subr.bf16.mxu1 %v993_v0  ;;  %746 = vmatprep.subr.bf16.mxu0 %v993_v0  ;;  %v841_v14 = vld [vmem:[#allocation8 + $0x20] sm:$0xff]   ;;  %v842_v15 = vld [vmem:[#allocation8 + $0x28] sm:$0xff]   ;;  %v844_v17 = vld [vmem:[#allocation8 + $0x38] sm:$0xff]  }
  0x4e   :  { %v845_v18 = vld [vmem:[#allocation8 + $0x40] sm:$0xff]   ;;  %v846_v19 = vld [vmem:[#allocation8 + $0x48] sm:$0xff]   ;;  %v847_v20 = vld [vmem:[#allocation8 + $0x50] sm:$0xff]   ;;  %v191_v26 = vsub.s32 0, %v1109_v25  ;;  %v214_v49 = vsub.s32 1, %v1109_v25  ;;  %v325_v3 = vsub.s32 2, %v1109_v25 }
  0x4f   :  { %735 = vmatmul.mubr.msk.bf16.vlgmr.msra.gmra.mrb[0].mxu0 %vm85_vm2, %v80_v5  ;;  %v848_v21 = vld [vmem:[#allocation8 + $0x58] sm:$0xff]   ;;  %v849_v22 = vld [vmem:[#allocation8 + $0x60] sm:$0xff]   ;;  %v850_v23 = vld [vmem:[#allocation8 + $0x68] sm:$0xff]  }
  0x50   :  { %741 = vmatpush3.bf16.msra.mxu1 %v147_v9  ;;  %747 = vmatpush3.bf16.msra.mxu0 %v837_v8  ;;  %v1115_v27 = vld [vmem:[%s1163_s5] sm:$0xff]  ;;  %v851_v41 = vld [vmem:[#allocation8 + $0x70] sm:$0xff]   ;;  %v852_v42 = vld [vmem:[#allocation8 + $0x78] sm:$0xff]   ;;  %s995_s5 = smov [#allocation10]  }
  0x51   :  { %762 = vmatprep.mubr.msk.bf16.mxu0 %vm994_vm0, %v993_v0  ;;  %748 = vmatprep.subr.bf16.mxu0 %v993_v0  ;;  %v192_v31 = vrot.slane %v1115_v27, %v191_v26  ;;  %v853_v43 = vld [vmem:[#allocation8 + $0x80] sm:$0xff]   ;;  %v854_v44 = vld [vmem:[#allocation8 + $0x88] sm:$0xff]   ;;  %v855_v45 = vld [vmem:[#allocation8 + $0x90] sm:$0xff]   ;;  %v215_v50 = vrot.slane %v1115_v27, %v214_v49  ;;  %v326_v4 = vrot.slane %v1115_v27, %v325_v3  ;;  %s644_s21 = sshll.u32 %s995_s5, 4  ;;  %s645_s21 = int_to_ptr.vmem [resolvable:$true] %s644_s21 }
  0x52   :  { %766 = vmatprep.subr.bf16.mxu1 %v993_v0  ;;  %v856_v46 = vld [vmem:[#allocation8 + $0x98] sm:$0xff]   ;;  %v857_v47 = vld [vmem:[#allocation8 + $0xa0] sm:$0xff]   ;;  %v858_v48 = vld [vmem:[#allocation8 + $0xa8] sm:$0xff]   ;;  %s957_s22 = scalar_lea.vmem %s645_s21, 128  ;;  %p962_p5 = scmp.lt.s32.totalorder %s645_s21, %s645_s21 }
  0x53   :  { %743 = vmatmul.mubr.msk.bf16.vlgmr.msra.gmra.mrb[0].mxu1 %vm142_vm3, %v78_v10  ;;  %v859_v58 = vld [vmem:[#allocation8 + $0xb0] sm:$0xff]   ;;  %v860_v59 = vld [vmem:[#allocation8 + $0xb8] sm:$0xff]   ;;  %v861_v60 = vld [vmem:[#allocation8 + $0xc0] sm:$0xff]   ;;  %p958_p4 = scmp.ne.s32.totalorder %s645_s21, %s957_s22  ;;  %p963_p6 = scmp.lt.s32.totalorder %s957_s22, %s957_s22 }
  0x54   :  { %782 = vmatprep.mubr.msk.bf16.mxu1 %vm994_vm0, %v993_v0  ;;  %749 = vmatpush3.bf16.msra.mxu0 %v838_v11  ;;  %v862_v61 = vld [vmem:[#allocation8 + $0xc8] sm:$0xff]   ;;  %v863_v62 = vld [vmem:[#allocation8 + $0xd0] sm:$0xff]   ;;  %v864_v63 = vld [vmem:[#allocation8 + $0xd8] sm:$0xff]  }
  0x55   :  { %750 = vmatprep.subr.bf16.mxu0 %v993_v0  ;;  %767 = vmatpush3.bf16.msra.mxu1 %v845_v18  ;;  %v865_v1 = vld [vmem:[#allocation8 + $0xe0] sm:$0xff]   ;;  %v866_v2 = vld [vmem:[#allocation8 + $0xe8] sm:$0xff]   ;;  %p964_p7 = por %p963_p6, %p962_p5 }
  0x56   :  { %768 = vmatprep.subr.bf16.mxu1 %v993_v0 }
  0x57   :  { %p965_p8 = pnand %p964_p7, %p958_p4 }
  0x58   :  { %751 = vmatpush3.bf16.msra.mxu0 %v839_v12  ;;  %v867_v12 = vld [vmem:[#allocation8 + $0xf0] sm:$0xff]  }
  0x59   :  { %752 = vmatprep.subr.bf16.mxu0 %v993_v0  ;;  %769 = vmatpush3.bf16.msra.mxu1 %v846_v19 }
  0x5a   :  { %770 = vmatprep.subr.bf16.mxu1 %v993_v0 }
  0x5c   :  { %753 = vmatpush3.bf16.msra.mxu0 %v840_v13  ;;  %v868_v13 = vld [vmem:[#allocation8 + $0xf8] sm:$0xff]  }
  0x5d   :  { %754 = vmatprep.subr.bf16.mxu0 %v993_v0  ;;  %771 = vmatpush3.bf16.msra.mxu1 %v847_v20 }
  0x5e   :  { %772 = vmatprep.subr.bf16.mxu1 %v993_v0 }
  0x60   :  { %755 = vmatpush3.bf16.msra.mxu0 %v841_v14  ;;  %v436_v14 = vsub.s32 3, %v1109_v25 }
  0x61   :  { %756 = vmatprep.subr.bf16.mxu0 %v993_v0  ;;  %773 = vmatpush3.bf16.msra.mxu1 %v848_v21 }
  0x62   :  { %774 = vmatprep.subr.bf16.mxu1 %v993_v0 }
  0x64   :  { %757 = vmatpush3.bf16.msra.mxu0 %v842_v15  ;;  %v437_v15 = vrot.slane %v1115_v27, %v436_v14 }
  0x65   :  { %758 = vmatprep.subr.bf16.mxu0 %v993_v0  ;;  %775 = vmatpush3.bf16.msra.mxu1 %v849_v22 }
  0x66   :  { %776 = vmatprep.subr.bf16.mxu1 %v993_v0 }
  0x68   :  { %759 = vmatpush3.bf16.msra.mxu0 %v843_v16 }
  0x69   :  { %760 = vmatprep.subr.bf16.mxu0 %v993_v0  ;;  %777 = vmatpush3.bf16.msra.mxu1 %v850_v23  ;;  %v547_v23 = vsub.s32 4, %v1109_v25 }
  0x6a   :  { %778 = vmatprep.subr.bf16.mxu1 %v993_v0 }
  0x6b   :  { %v548_v24 = vrot.slane %v1115_v27, %v547_v23 }
  0x6c   :  { %761 = vmatpush3.bf16.msra.mxu0 %v844_v17 }
  0x6d   :  { %786 = vmatprep.subr.bf16.mxu0 %v993_v0  ;;  %779 = vmatpush3.bf16.msra.mxu1 %v851_v41 }
  0x6e   :  { %780 = vmatprep.subr.bf16.mxu1 %v993_v0 }
  0x71   :  { %781 = vmatpush3.bf16.msra.mxu1 %v852_v42 }
  0x72   :  { %806 = vmatprep.subr.bf16.mxu1 %v993_v0 }
 0x122   :  { %v127_v28 = vpop.f32.mrb[0].mxu0 }
 0x123   :  { %v736_v29 = vpop.f32.mrb[1].mxu0 }
 0x124   :  { %v130_v30 = vpop.f32.mrb[2].mxu0 }
 0x125   :  { %v737_v32 = vpop.f32.mrb[3].mxu0 }
 0x126   :  { %v183_v33 = vpop.f32.mrb[0].mxu1 }
 0x127   :  { %v184_v34 = vadd.f32 %v183_v33, %v127_v28  ;;  %v744_v35 = vpop.f32.mrb[1].mxu1 }
 0x128   :  { %v186_v36 = vpop.f32.mrb[2].mxu1 }
 0x129   :  { %v193_v37 = vadd.f32 %v192_v31, %v184_v34  ;;  %v745_v38 = vpop.f32.mrb[3].mxu1 }
 0x12b   :  { %v194_v39 = vmax.f32 %v193_v37, 0.0 }
 0x12d   :  { %v195_v40 = vpack.c.bf16 %v194_v39, %v194_v39 }
 0x12f   :  { %763 = vmatmul.mubr.bf16.vlgmr.msra.gmra.mrb[4].mxu0 %v195_v40 }
 0x130   :  { %802 = vmatprep.mubr.msk.bf16.mxu0 %vm994_vm0, %v993_v0  ;;  %787 = vmatpush3.bf16.msra.mxu0 %v853_v43 }
 0x131   :  { %788 = vmatprep.subr.bf16.mxu0 %v993_v0 }
 0x134   :  { %789 = vmatpush3.bf16.msra.mxu0 %v854_v44 }
 0x135   :  { %790 = vmatprep.subr.bf16.mxu0 %v993_v0 }
 0x138   :  { %791 = vmatpush3.bf16.msra.mxu0 %v855_v45 }
 0x139   :  { %792 = vmatprep.subr.bf16.mxu0 %v993_v0 }
 0x13c   :  { %793 = vmatpush3.bf16.msra.mxu0 %v856_v46 }
 0x13d   :  { %794 = vmatprep.subr.bf16.mxu0 %v993_v0 }
 0x140   :  { %795 = vmatpush3.bf16.msra.mxu0 %v857_v47 }
 0x141   :  { %796 = vmatprep.subr.bf16.mxu0 %v993_v0 }
 0x144   :  { %797 = vmatpush3.bf16.msra.mxu0 %v858_v48 }
 0x145   :  { %798 = vmatprep.subr.bf16.mxu0 %v993_v0 }
 0x148   :  { %799 = vmatpush3.bf16.msra.mxu0 %v859_v58 }
 0x149   :  { %800 = vmatprep.subr.bf16.mxu0 %v993_v0 }
 0x14c   :  { %801 = vmatpush3.bf16.msra.mxu0 %v860_v59 }
 0x202   :  { %v298_v51 = vpop.f32.mrb[4].mxu0 }
 0x203   :  { %v299_v52 = vadd.f32 %v298_v51, %v215_v50  ;;  %v764_v53 = vpop.f32.mrb[5].mxu0 }
 0x204   :  { %v301_v54 = vpop.f32.mrb[6].mxu0 }
 0x205   :  { %v304_v55 = vmax.f32 %v299_v52, 0.0  ;;  %v765_v56 = vpop.f32.mrb[7].mxu0 }
 0x207   :  { %v305_v57 = vpack.c.bf16 %v304_v55, %v304_v55 }
 0x209   :  { %783 = vmatmul.mubr.bf16.vlgmr.msra.gmra.mrb[4].mxu1 %v305_v57 }
 0x20a   :  { %822 = vmatprep.mubr.msk.bf16.mxu1 %vm994_vm0, %v993_v0  ;;  %807 = vmatpush3.bf16.msra.mxu1 %v861_v60 }
 0x20b   :  { %808 = vmatprep.subr.bf16.mxu1 %v993_v0 }
 0x20e   :  { %809 = vmatpush3.bf16.msra.mxu1 %v862_v61 }
 0x20f   :  { %810 = vmatprep.subr.bf16.mxu1 %v993_v0 }
 0x212   :  { %811 = vmatpush3.bf16.msra.mxu1 %v863_v62 }
 0x213   :  { %812 = vmatprep.subr.bf16.mxu1 %v993_v0 }
 0x216   :  { %813 = vmatpush3.bf16.msra.mxu1 %v864_v63 }
 0x217   :  { %814 = vmatprep.subr.bf16.mxu1 %v993_v0 }
 0x21a   :  { %815 = vmatpush3.bf16.msra.mxu1 %v865_v1 }
 0x21b   :  { %816 = vmatprep.subr.bf16.mxu1 %v993_v0 }
 0x21e   :  { %817 = vmatpush3.bf16.msra.mxu1 %v866_v2 }
 0x21f   :  { %818 = vmatprep.subr.bf16.mxu1 %v993_v0 }
 0x222   :  { %819 = vmatpush3.bf16.msra.mxu1 %v867_v12 }
 0x223   :  { %820 = vmatprep.subr.bf16.mxu1 %v993_v0 }
 0x226   :  { %821 = vmatpush3.bf16.msra.mxu1 %v868_v13 }
 0x2dc   :  { %v409_v5 = vpop.f32.mrb[4].mxu1 }
 0x2dd   :  { %v410_v6 = vadd.f32 %v409_v5, %v326_v4  ;;  %v784_v7 = vpop.f32.mrb[5].mxu1 }
 0x2de   :  { %v412_v8 = vpop.f32.mrb[6].mxu1 }
 0x2df   :  { %v415_v9 = vmax.f32 %v410_v6, 0.0  ;;  %v785_v10 = vpop.f32.mrb[7].mxu1 }
 0x2e1   :  { %v416_v11 = vpack.c.bf16 %v415_v9, %v415_v9 }
 0x2e3   :  { %803 = vmatmul.mubr.bf16.vlgmr.msra.gmra.mrb[8].mxu0 %v416_v11 }
 0x3b6   :  { %v520_v16 = vpop.f32.mrb[8].mxu0 }
 0x3b7   :  { %v521_v17 = vadd.f32 %v520_v16, %v437_v15  ;;  %v804_v18 = vpop.f32.mrb[9].mxu0 }
 0x3b8   :  { %v523_v19 = vpop.f32.mrb[10].mxu0 }
 0x3b9   :  { %v526_v20 = vmax.f32 %v521_v17, 0.0  ;;  %v805_v21 = vpop.f32.mrb[11].mxu0 }
 0x3bb   :  { %v527_v22 = vpack.c.bf16 %v526_v20, %v526_v20 }
 0x3bd   :  { %823 = vmatmul.mubr.bf16.vlgmr.msra.gmra.mrb[8].mxu1 %v527_v22 }
 0x490   :  { %v631_v0 = vpop.f32.mrb[8].mxu1 }
 0x491   :  { %v632_v26 = vadd.f32 %v631_v0, %v548_v24  ;;  %v824_v28 = vpop.f32.mrb[9].mxu1 }
 0x492   :  { %v634_v29 = vpop.f32.mrb[10].mxu1 }
 0x493   :  { %637 = vst [vmem:[#allocation10] sm:$0xff] %v632_v26  ;;  %v825_v30 = vpop.f32.mrb[11].mxu1 }
 0x494   :  { %968 = shalt.err (!%p965_p8)
}
 0x495   :  { %s969_s26 = scalar_lea.hbm %s1164_s6, 128 }
 0x496   :  { %p970_p9 = scmp.ne.s32.totalorder %s1164_s6, %s969_s26  ;;  %p973_p10 = scmp.lt.u32.totalorder %s969_s26, %s1164_s6 }
 0x498   :  { %p975_p11 = pnand %p973_p10, %p970_p9 }
 0x49a   :  { %978 = shalt.err (!%p975_p11)
}
 0x49b   :  { %647 = dma.vmem_to_hbm [thread:$0]  %s645_s21, 128, %s1164_s6, [#allocation4]  }
 0x49c   :  { %985 = dma.done.wait [#allocation4], 128  }
 0x49d   :  { %986 = vsyncadd [#allocation4], 4294967168 }
 0x49e   :  { %651 = vsyncpa [#allocation3], 1 }
 0x49f   :  { %652 = vsyncpa [#allocation6], 1 }
 0x4a0   :  { %653 = vsyncpa [#allocation9], 1 }
 0x4a1   :  { %654 = vsyncpa [#allocation4], 1 }

</bundles_post_ra>
